<compile_context>
chip_gen: v6e
topology: v6e:2x2x1
jax: 0.10.0
libtpu: 0.0.40
codegen_flags: <defaults>
</compile_context>

<pallas_src>
import jax
import jax.numpy as jnp
import numpy as np
from jax.experimental import pallas as pl
from jax.experimental.pallas import tpu as pltpu

EPS = 1e-5


# ----------------------------------------------------------------------------
# Pallas kernels
# ----------------------------------------------------------------------------
def qkv_kernel(x_ref, w1_ref, b1_ref, wqkv_ref, bqkv_ref, o_ref):
    # h = relu(bn1(linear1(x)))  with BN1 folded into w1/b1
    h = jnp.dot(x_ref[...], w1_ref[...], preferred_element_type=jnp.float32)
    h = jnp.maximum(h + b1_ref[...], 0.0)
    # q|k|v in one MXU pass -> one lane-dense 128-wide bf16 store
    qkv = jnp.dot(h, wqkv_ref[...], preferred_element_type=jnp.float32) + bqkv_ref[...]
    o_ref[...] = qkv.astype(o_ref.dtype)


def pt_tail_kernel(qkv_ref, gk_ref, gv_ref, rel1_ref, idn_ref,
                   wp2_ref, bp2_ref,               # Linear(3, C) of linear_p stage-2
                   sw0_ref, shw0_ref,              # BN(C) before linear_w (affine)
                   ww1_ref, bw1_ref,               # Linear(C, C/s) (+BN folded), bf16 W
                   ww2_ref, bw2_ref,               # Linear(C/s, C/s)
                   s2_ref, b2_ref,                 # BN2 affine
                   w3_ref, b3_ref,                 # linear3 (+BN3 folded)
                   o_ref):
    tm, ns, c = gk_ref.shape
    c4 = ww2_ref.shape[0]
    s = c // c4

    # ---- linear_p stage-2: p_r = relu1 @ wp2 + bp2 as 3 VPU FMAs (K=3 off the MXU)
    rel = rel1_ref[...].astype(jnp.float32).reshape(tm * ns, 3)
    wp2 = wp2_ref[...]                                          # (3, C)
    p_r = (rel[:, 0:1] * wp2[0:1, :] + rel[:, 1:2] * wp2[1:2, :]
           + rel[:, 2:3] * wp2[2:3, :] + bp2_ref[...])          # (tm*ns, C) f32
    pr3 = p_r.reshape(tm, ns, c)

    # ---- w = x_k - x_q + p_r  (out_planes == mid_planes -> the .sum(2) is identity)
    q = qkv_ref[:, 0:c].astype(jnp.float32)                     # q columns of the slab
    w = gk_ref[...].astype(jnp.float32) - q[:, None, :] + pr3
    w = jnp.maximum(w * sw0_ref[...] + shw0_ref[...], 0.0)      # BN(C) + ReLU

    # ---- linear_w: Linear(C, C/s)(+BN folded)+ReLU -> Linear(C/s, C/s) ----
    # big GEMM in native bf16 on the MXU (f32 accumulate); the 4x4 GEMM stays f32.
    w2 = (jnp.dot(w.reshape(tm * ns, c).astype(jnp.bfloat16), ww1_ref[...],
                  preferred_element_type=jnp.float32) + bw1_ref[...])
    w2 = jnp.maximum(w2, 0.0)
    w2 = (jnp.dot(w2, ww2_ref[...], preferred_element_type=jnp.float32)
          + bw2_ref[...])
    w2 = w2.reshape(tm, ns, c4)

    # ---- softmax over the neighbor dimension (dim=1) ----
    w2 = w2 - jnp.max(w2, axis=1, keepdims=True)
    e = jnp.exp(w2)
    attn = e * pl.reciprocal(jnp.sum(e, axis=1, keepdims=True), approx=True)

    # ---- ((x_v + p_r).view(n, ns, s, c/s) * w[:, :, None, :]).sum(1).view(n, c) ----
    # channel ch uses weight attn[..., ch % c4]; lane-concat keeps the natural
    # (tm, ns, C) layout (no 4-D sublane-padded reshape).
    wf = jnp.concatenate([attn] * s, axis=-1)                   # (tm, ns, C)
    y = jnp.sum((gv_ref[...].astype(jnp.float32) + pr3) * wf, axis=1)   # (tm, C)

    # ---- fused tail: relu(bn3(linear3(relu(bn2(y)))) + identity) ----
    h = jnp.maximum(y * s2_ref[...] + b2_ref[...], 0.0)
    h = jnp.dot(h, w3_ref[...], preferred_element_type=jnp.float32) + b3_ref[...]
    o_ref[...] = jnp.maximum(h + idn_ref[...], 0.0)


# ----------------------------------------------------------------------------
# Pallas wrappers
# ----------------------------------------------------------------------------
def _full_spec(a):
    return pl.BlockSpec(a.shape, lambda *_: (0,) * a.ndim)


def _pad_rows(a, m):
    pad = (-a.shape[0]) % m
    if pad:
        a = jnp.pad(a, ((0, pad),) + ((0, 0),) * (a.ndim - 1))
    return a


def qkv_forward(x, w1, b1, wqkv, bqkv, *, tm, vmem_limit_mb=32):
    n, cin = x.shape
    cout = wqkv.shape[1]                     # padded to 128 (lane-dense slab)
    assert n % tm == 0
    weights = (w1, b1, wqkv, bqkv)
    return pl.pallas_call(
        qkv_kernel,
        grid=(n // tm,),
        in_specs=[pl.BlockSpec((tm, cin), lambda i: (i, 0))]
                 + [_full_spec(a) for a in weights],
        out_specs=pl.BlockSpec((tm, cout), lambda i: (i, 0)),
        out_shape=jax.ShapeDtypeStruct((n, cout), jnp.bfloat16),
        compiler_params=pltpu.CompilerParams(
            dimension_semantics=("parallel",),
            vmem_limit_bytes=vmem_limit_mb << 20),
    )(x, *weights)


def pt_tail_forward(qkv, gk, gv, rel1, idn, vmem_weights, *, tm, vmem_limit_mb=32):
    n, ns, c = gk.shape
    cqkv = qkv.shape[1]
    assert n % tm == 0
    in_specs = ([pl.BlockSpec((tm, cqkv), lambda i: (i, 0)),       # q|k|v slab (bf16)
                 pl.BlockSpec((tm, ns, c), lambda i: (i, 0, 0)),   # gk (bf16)
                 pl.BlockSpec((tm, ns, c), lambda i: (i, 0, 0)),   # gv (bf16)
                 pl.BlockSpec((tm, ns, 3), lambda i: (i, 0, 0)),   # relu(lin_p1) (bf16)
                 pl.BlockSpec((tm, c), lambda i: (i, 0))]          # identity (f32)
                + [_full_spec(a) for a in vmem_weights])
    return pl.pallas_call(
        pt_tail_kernel,
        grid=(n // tm,),
        in_specs=in_specs,
        out_specs=pl.BlockSpec((tm, c), lambda i: (i, 0)),
        out_shape=jax.ShapeDtypeStruct((n, c), jnp.float32),
        compiler_params=pltpu.CompilerParams(
            dimension_semantics=("parallel",),
            vmem_limit_bytes=vmem_limit_mb << 20),
    )(qkv, gk, gv, rel1, idn, *vmem_weights)


# ----------------------------------------------------------------------------
# JAX glue: kNN query + grouping (pointops.queryandgroup) and the full block
# ----------------------------------------------------------------------------
def knn_idx(p, o, nsample):
    # TODO(synk): brute-force O(N^2) kNN; real pointops uses spatial structures.
    n = p.shape[0]
    batch = jnp.searchsorted(o, jnp.arange(n, dtype=o.dtype), side="right")
    d2 = jnp.sum((p[:, None, :] - p[None, :, :]) ** 2, axis=-1)
    d2 = jnp.where(batch[:, None] != batch[None, :], jnp.inf, d2)
    _, idx = jax.lax.top_k(-d2, nsample)        # nearest first (includes self)
    return idx


def point_transformer_block(p, x, o, prm, *, nsample, share_planes, tm):
    n, _ = x.shape
    c = prm["w1"].shape[1]

    # ---- trace-time constant folding of the eval-mode BatchNorms into weights ----
    inv = 1.0 / np.sqrt(1.0 + EPS)              # running_mean=0, running_var=1
    w1f = prm["w1"] * (prm["bn1_g"] * inv)[None, :]
    b1 = prm["bn1_b"][None, :]
    # q|k|v weights concatenated and zero-padded to a lane-dense 128-wide slab
    wqkv = jnp.concatenate([prm["wq"], prm["wk"], prm["wv"]], axis=1)
    bqkv = jnp.concatenate([prm["bq"], prm["bk"], prm["bv"]])
    c3 = wqkv.shape[1]
    cpad = max(128, ((c3 + 127) // 128) * 128)
    wqkv = jnp.pad(wqkv, ((0, 0), (0, cpad - c3)))
    bqkv = jnp.pad(bqkv, (0, cpad - c3))[None, :]

    sp = prm["bnp_g"] * inv
    wp1f = prm["wp1"] * sp[None, :]
    bp1f = prm["bp1"] * sp + prm["bnp_b"]

    sw0 = (prm["bnw0_g"] * inv)[None, :]
    shw0 = prm["bnw0_b"][None, :]
    sw1 = prm["bnw1_g"] * inv
    ww1f = (prm["ww1"] * sw1[None, :]).astype(jnp.bfloat16)     # bf16 MXU operand
    bw1f = (prm["bw1"] * sw1 + prm["bnw1_b"])[None, :]

    s2 = (prm["bn2_g"] * inv)[None, :]
    b2 = prm["bn2_b"][None, :]
    w3f = prm["w3"] * (prm["bn3_g"] * inv)[None, :]
    b3 = prm["bn3_b"][None, :]

    # ---- kernel 1: fused linear1 + BN1 + ReLU and concatenated q/k/v projection ----
    xp = _pad_rows(x, tm)                                  # padded identity as well
    qkv = qkv_forward(xp, w1f, b1, wqkv, bqkv, tm=tm)      # (Np, 128) bf16 slab

    # ---- pointops.queryandgroup (kNN + gather) in plain JAX glue ----
    # TODO(synk): fuse this gather into pt_tail_kernel (VMEM-resident k/v slab).
    idx = knn_idx(p, o, nsample)
    gpr = jnp.take(p, idx, axis=0) - p[:, None, :]         # use_xyz=True rel. coords
    # precompute linear_p stage-1 (Linear(3,3)+BN(3)+ReLU) in f32, ship bf16
    rel1 = jnp.maximum(gpr @ wp1f + bp1f, 0.0).astype(jnp.bfloat16)
    gk = jnp.take(qkv[:, c:2 * c], idx, axis=0)            # bf16, no astype pass
    gv = jnp.take(qkv[:, 2 * c:3 * c], idx, axis=0)        # use_xyz=False

    gkp = _pad_rows(gk, tm)
    gvp = _pad_rows(gv, tm)
    rel1p = _pad_rows(rel1, tm)

    # ---- kernel 2: PointTransformerLayer core + fused block tail ----
    vmem_weights = (prm["wp2"], prm["bp2"][None, :], sw0, shw0,
                    ww1f, bw1f, prm["ww2"], prm["bw2"][None, :],
                    s2, b2, w3f, b3)
    out = pt_tail_forward(qkv, gkp, gvp, rel1p, xp, vmem_weights, tm=tm)[:n]
    return [p, out, o]


# ----------------------------------------------------------------------------
# Pure-JAX reference (same eval-mode BN) for a correctness check
# ----------------------------------------------------------------------------
def reference_forward(p, x, o, prm, *, nsample, share_planes):
    bn = lambda v, g, b: v / jnp.sqrt(1.0 + EPS) * g + b
    h = jnp.maximum(bn(x @ prm["w1"], prm["bn1_g"], prm["bn1_b"]), 0.0)
    q = h @ prm["wq"] + prm["bq"]
    k = h @ prm["wk"] + prm["bk"]
    v = h @ prm["wv"] + prm["bv"]
    idx = knn_idx(p, o, nsample)
    gpr = p[idx] - p[:, None, :]
    gk, gv = k[idx], v[idx]
    pr = gpr @ prm["wp1"] + prm["bp1"]
    pr = jnp.maximum(bn(pr, prm["bnp_g"], prm["bnp_b"]), 0.0)
    pr = pr @ prm["wp2"] + prm["bp2"]
    w = gk - q[:, None, :] + pr
    w = jnp.maximum(bn(w, prm["bnw0_g"], prm["bnw0_b"]), 0.0)
    w = w @ prm["ww1"] + prm["bw1"]
    w = jnp.maximum(bn(w, prm["bnw1_g"], prm["bnw1_b"]), 0.0)
    w = w @ prm["ww2"] + prm["bw2"]
    w = jax.nn.softmax(w, axis=1)
    n, ns, c = gv.shape
    s = share_planes
    y = ((gv + pr).reshape(n, ns, s, c // s) * w[:, :, None, :]).sum(1).reshape(n, c)
    y = jnp.maximum(bn(y, prm["bn2_g"], prm["bn2_b"]), 0.0)
    y = bn(y @ prm["w3"], prm["bn3_g"], prm["bn3_b"])
    return jnp.maximum(y + x, 0.0)


# ----------------------------------------------------------------------------
# Deterministic parameter init
# ----------------------------------------------------------------------------
def init_params(key, c, share_planes):
    c4 = c // share_planes
    ks = jax.random.split(key, 32)
    w = lambda k, shp: 0.1 * jax.random.normal(k, shp, jnp.float32)
    g = lambda k, shp: 1.0 + 0.1 * jax.random.normal(k, shp, jnp.float32)
    return dict(
        w1=w(ks[0], (c, c)),
        bn1_g=g(ks[1], (c,)), bn1_b=w(ks[2], (c,)),
        wq=w(ks[3], (c, c)), bq=w(ks[4], (c,)),
        wk=w(ks[5], (c, c)), bk=w(ks[6], (c,)),
        wv=w(ks[7], (c, c)), bv=w(ks[8], (c,)),
        wp1=w(ks[9], (3, 3)), bp1=w(ks[10], (3,)),
        bnp_g=g(ks[11], (3,)), bnp_b=w(ks[12], (3,)),
        wp2=w(ks[13], (3, c)), bp2=w(ks[14], (c,)),
        bnw0_g=g(ks[15], (c,)), bnw0_b=w(ks[16], (c,)),
        ww1=w(ks[17], (c, c4)), bw1=w(ks[18], (c4,)),
        bnw1_g=g(ks[19], (c4,)), bnw1_b=w(ks[20], (c4,)),
        ww2=w(ks[21], (c4, c4)), bw2=w(ks[22], (c4,)),
        bn2_g=g(ks[23], (c,)), bn2_b=w(ks[24], (c,)),
        w3=w(ks[25], (c, c)),
        bn3_g=g(ks[26], (c,)), bn3_b=w(ks[27], (c,)),
    )


if __name__ == "__main__":
    # in_planes == planes == 32 (residual add); N deliberately NOT a multiple of TM
    # to exercise the remainder-padding path.  Production: TM 128 (v5e/v7x) to
    # 256-512 (v6e) with vmem_limit_bytes re-derived; keep the grid length even on
    # v7x so both TensorCores are busy.
    N, C, NSAMPLE, SHARE = 80, 32, 16, 8
    TM = 32

    key = jax.random.PRNGKey(0)
    kp, kx, kw = jax.random.split(key, 3)
    p = jax.random.normal(kp, (N, 3), jnp.float32)
    x = jax.random.normal(kx, (N, C), jnp.float32)
    o = jnp.array([N // 2, N], dtype=jnp.int32)   # two batches of 40 points
    prm = init_params(kw, C, SHARE)

    p_out, y_out, o_out = point_transformer_block(
        p, x, o, prm, nsample=NSAMPLE, share_planes=SHARE, tm=TM)
    jax.block_until_ready(y_out)

    y_ref = reference_forward(p, x, o, prm, nsample=NSAMPLE, share_planes=SHARE)
    np.testing.assert_allclose(np.asarray(y_out), np.asarray(y_ref),
                               rtol=1e-2, atol=1e-2)
    assert y_out.shape == (N, C) and p_out.shape == p.shape and o_out.shape == o.shape
    print("KERNEL_OK")
</pallas_src>

<mosaic_0001>
module attributes {stable_mosaic.version = 11 : i64} {
  func.func @qkv_kernel(%arg0: i32, %arg1: memref<32x32xf32, #tpu.memory_space<vmem>>, %arg2: memref<32x32xf32, #tpu.memory_space<vmem>>, %arg3: memref<1x32xf32, #tpu.memory_space<vmem>>, %arg4: memref<32x128xf32, #tpu.memory_space<vmem>>, %arg5: memref<1x128xf32, #tpu.memory_space<vmem>>, %arg6: memref<32x128xbf16, #tpu.memory_space<vmem>>) attributes {dimension_semantics = [#tpu.dimension_semantics<parallel>], iteration_bounds = array<i64: 3>, scalar_prefetch = 0 : i64, scratch_operands = 0 : i64, tpu.core_type = #tpu.core_type<tc>, window_params = [{transform_indices = @transform_0, window_bounds = array<i64: 32, 32>}, {pipeline_mode = #tpu.pipeline_mode<synchronous>, transform_indices = @transform_1, window_bounds = array<i64: 32, 32>}, {pipeline_mode = #tpu.pipeline_mode<synchronous>, transform_indices = @transform_2, window_bounds = array<i64: 1, 32>}, {pipeline_mode = #tpu.pipeline_mode<synchronous>, transform_indices = @transform_3, window_bounds = array<i64: 32, 128>}, {pipeline_mode = #tpu.pipeline_mode<synchronous>, transform_indices = @transform_4, window_bounds = array<i64: 1, 128>}, {transform_indices = @transform_5, window_bounds = array<i64: 32, 128>}]} {
    %c0 = arith.constant 0 : index
    %c0_0 = arith.constant 0 : index
    %0 = vector.load %arg1[%c0, %c0_0] : memref<32x32xf32, #tpu.memory_space<vmem>>, vector<32x32xf32>
    %c0_1 = arith.constant 0 : index
    %c0_2 = arith.constant 0 : index
    %1 = vector.load %arg2[%c0_1, %c0_2] : memref<32x32xf32, #tpu.memory_space<vmem>>, vector<32x32xf32>
    %cst = arith.constant dense<0.000000e+00> : vector<32x32xf32>
    %2 = tpu.matmul %0, %1, %cst {dimension_numbers = #tpu.dot_dimension_numbers<[1], [0], [0], [1], [0, 0, 1, 1], [], []>} : vector<32x32xf32>, vector<32x32xf32>, vector<32x32xf32> -> vector<32x32xf32>
    %c0_3 = arith.constant 0 : index
    %c0_4 = arith.constant 0 : index
    %3 = vector.load %arg3[%c0_3, %c0_4] : memref<1x32xf32, #tpu.memory_space<vmem>>, vector<1x32xf32>
    %4 = vector.broadcast %3 : vector<1x32xf32> to vector<32x32xf32>
    %5 = arith.addf %2, %4 : vector<32x32xf32>
    %cst_5 = arith.constant 0.000000e+00 : f32
    %6 = vector.broadcast %cst_5 : f32 to vector<32x32xf32>
    %7 = arith.maximumf %5, %6 : vector<32x32xf32>
    %c0_6 = arith.constant 0 : index
    %c0_7 = arith.constant 0 : index
    %8 = vector.load %arg4[%c0_6, %c0_7] : memref<32x128xf32, #tpu.memory_space<vmem>>, vector<32x128xf32>
    %cst_8 = arith.constant dense<0.000000e+00> : vector<32x128xf32>
    %9 = tpu.matmul %7, %8, %cst_8 {dimension_numbers = #tpu.dot_dimension_numbers<[1], [0], [0], [1], [0, 0, 1, 1], [], []>} : vector<32x32xf32>, vector<32x128xf32>, vector<32x128xf32> -> vector<32x128xf32>
    %c0_9 = arith.constant 0 : index
    %c0_10 = arith.constant 0 : index
    %10 = vector.load %arg5[%c0_9, %c0_10] : memref<1x128xf32, #tpu.memory_space<vmem>>, vector<1x128xf32>
    %11 = vector.broadcast %10 : vector<1x128xf32> to vector<32x128xf32>
    %12 = arith.addf %9, %11 : vector<32x128xf32>
    %13 = arith.truncf %12 : vector<32x128xf32> to vector<32x128xbf16>
    %c0_11 = arith.constant 0 : index
    %c0_12 = arith.constant 0 : index
    %14 = vector.load %arg6[%c0_11, %c0_12] : memref<32x128xbf16, #tpu.memory_space<vmem>>, vector<32x128xbf16>
    tpu.vector_store %arg6[%c0_11, %c0_12], %13 {strides = array<i32>} : memref<32x128xbf16, #tpu.memory_space<vmem>>, vector<32x128xbf16>,
    return
  }
  func.func @transform_0(%arg0: i32) -> (i32, i32) {
    %c0_i32 = arith.constant 0 : i32
    %c0_i32_0 = arith.constant 0 : i32
    return %arg0, %c0_i32 : i32, i32
  }
  func.func @transform_1(%arg0: i32) -> (i32, i32) {
    %c0_i32 = arith.constant 0 : i32
    %c0_i32_0 = arith.constant 0 : i32
    %c0_i32_1 = arith.constant 0 : i32
    return %c0_i32, %c0_i32_0 : i32, i32
  }
  func.func @transform_2(%arg0: i32) -> (i32, i32) {
    %c0_i32 = arith.constant 0 : i32
    %c0_i32_0 = arith.constant 0 : i32
    %c0_i32_1 = arith.constant 0 : i32
    return %c0_i32, %c0_i32_0 : i32, i32
  }
  func.func @transform_3(%arg0: i32) -> (i32, i32) {
    %c0_i32 = arith.constant 0 : i32
    %c0_i32_0 = arith.constant 0 : i32
    %c0_i32_1 = arith.constant 0 : i32
    return %c0_i32, %c0_i32_0 : i32, i32
  }
  func.func @transform_4(%arg0: i32) -> (i32, i32) {
    %c0_i32 = arith.constant 0 : i32
    %c0_i32_0 = arith.constant 0 : i32
    %c0_i32_1 = arith.constant 0 : i32
    return %c0_i32, %c0_i32_0 : i32, i32
  }
  func.func @transform_5(%arg0: i32) -> (i32, i32) {
    %c0_i32 = arith.constant 0 : i32
    %c0_i32_0 = arith.constant 0 : i32
    return %arg0, %c0_i32 : i32, i32
  }
}

</mosaic_0001>

<bundles_post_ra>
// kernel: tpu_custom_call.1
= control target key start
LH: loop header
LB: loop body
LE: loop exit
PB: predicated region body
PF: predicated region fallthrough
CT: control target
= control target key end

     0   :  { %10 = vsyncpa [#allocation3], 0  ;;  %s908_s0 = inlined_call_operand.vmem [shape: f32[96,32], index: 0, kind: input, shape index: {}]   ;;  %s909_s1 = inlined_call_operand.vmem [shape: f32[32,32], index: 1, kind: input, shape index: {}]   ;;  %s910_s2 = inlined_call_operand.vmem [shape: f32[1,32], index: 2, kind: input, shape index: {}]   ;;  %s911_s3 = inlined_call_operand.vmem [shape: f32[32,128], index: 3, kind: input, shape index: {}]   ;;  %s912_s4 = inlined_call_operand.vmem [shape: f32[1,128], index: 4, kind: input, shape index: {}]   ;;  %s913_s5 = inlined_call_operand.hbm [shape: bf16[96,128], index: 5, kind: output, shape index: {}]  }
   0x1   :  { %12 = vsyncpa [#allocation3 + $0x1], 0  ;;  %s769_s18 = smov 0   ;;  %s771_s19 = smov 0  }
   0x2   :  { %s773_s20 = smov 0   ;;  %s775_s21 = smov 0  }
   0x3 LB: > { %s790_s22 = sadd.s32 4294967295, %s734_s21   ;;  %s547_s23 = sadd.s32 4294967294, %s734_s21   ;;  %s734_s21 = sphi %s775_s21, %s919_s21   ;;  %s730_s20 = sphi %s773_s20, %s918_s20   ;;  %s726_s19 = sphi %s771_s19, %s917_s19   ;;  %s722_s18 = sphi %s769_s18, %s916_s18  }
   0x4   : > { %s794_s24 = sadd.s32 1, %s734_s21   ;;  %s135_s25 = sadd.s32 1, %s730_s20 }
   0x5   : > { %s132_s26 = ssub.s32 %s734_s21, %s794_s24  ;;  %p145_p0 = scmp.ne.s32.totalorder %s730_s20, %s726_s19 }
   0x6   : > { %p133_p1 = scmp.eq.s32.totalorder %s132_s26, 0  ;;  %p146_p2 = scmp.eq.s32.totalorder %s790_s22, 2 }
   0x7   : > { %p151_p3 = scmp.ne.s32.totalorder %s726_s19, %s722_s18  ;;  %p152_p4 = scmp.eq.s32.totalorder %s547_s23, 2 }
   0x8   : > { %s805_s27 = scalar_select %p133_p1, %s730_s20, %s135_s25  }
   0x9   : > { %p807_p5 = por %p146_p2, %p145_p0  ;;  %p811_p6 = por %p152_p4, %p151_p3 }
   0xa   : > { %p550_p7 = scmp.ge.s32.totalorder %s734_s21, 1  ;;  %p191_p8 = scmp.lt.s32.totalorder %s734_s21, 4 }
   0xc   : > { %p192_p9 = pnand %p550_p7, %p191_p8 }
   0xd   : > { %s552_s9 = sshll.u32 (!%p192_p9), %s790_s22, 2  ;;  %s216_s12 = sand.u32 (!%p192_p9), 1, %s726_s19  }
   0xe   : > { %195 = sbr.rel (%p192_p9) target bundleno = 445 (0x1bd), region = 40  ;;  %p220_p10 = scmp.lt.s32.totalorder (!%p192_p9), %s552_s9, 11 }
   0xf   : > { %s551_s15 = sshll.u32 (!%p192_p9), %s216_s12, 4  ;;  %s577_s23 = sshll.u32 (!%p192_p9), %s790_s22, 8 }
  0x10   : > { %s218_s16 = scalar_lea.vmem (!%p192_p9), [#allocation2], %s551_s15  ;;  %s866_s30 = scalar_lea.hbm (!%p192_p9), %s913_s5, %s577_s23 }
  0x11   : > { %s868_s6 = scalar_lea.sflag (!%p192_p9), [#allocation3], %s216_s12  ;;  %s736_s22 = smov (!%p192_p9), [#allocation2]  }
  0x12   : > { %s678_s8 = sshll.u32 (!%p192_p9), %s736_s22, 4  ;;  %s679_s8 = int_to_ptr.vmem [resolvable:$false] %s678_s8 }
  0x13   : > { %v233_v0 = vld [vmem:[%s909_s1 + $0x18] sm:$0xff]  ;;  %v232_v1 = vld [vmem:[%s909_s1 + $0x10] sm:$0xff]  ;;  %v231_v2 = vld [vmem:[%s909_s1 + $0x8] sm:$0xff]  ;;  %s921_s9 = smov (!%p220_p10, %s552_s9), 11  ;;  %vm241_vm0 = vcmask 261120  }
  0x14   : > { %605 = vmatprep.subr.mxu0 %v233_v0  ;;  %v230_v3 = vld [vmem:[%s909_s1] sm:$0xff]  ;;  %s553_s14 = sshll.u32 %s921_s9, 3  ;;  %v346_v8 = vld [vmem:[%s911_s3 + $0x18] sm:$0xff]  ;;  %v345_v9 = vld [vmem:[%s911_s3 + $0x10] sm:$0xff]  ;;  %s680_s9 = scalar_lea.vmem %s679_s8, 512 }
  0x15   : > { %606 = vmatpush3.msra.mxu0 %v233_v0  ;;  %s223_s17 = scalar_lea.vmem %s908_s0, %s553_s14  ;;  %619 = vmatprep.subr.mxu1 %v346_v8  ;;  %v344_v10 = vld [vmem:[%s911_s3 + $0x8] sm:$0xff]  ;;  %v343_v11 = vld [vmem:[%s911_s3] sm:$0xff] }
  0x16   : > { %607 = vmatprep.subr.mxu0 %v232_v1  ;;  %v226_v4 = vld [vmem:[%s223_s17] sm:$0xff]  ;;  %v227_v5 = vld [vmem:[%s223_s17 + $0x8] sm:$0xff]  ;;  %v228_v6 = vld [vmem:[%s223_s17 + $0x10] sm:$0xff]  ;;  %620 = vmatpush3.msra.mxu1 %v346_v8 }
  0x17   : > { %608 = vmatpush3.msra.mxu0 %v232_v1  ;;  %613 = vmatprep.mubr.msk.f32.mxu0 %vm241_vm0, %v226_v4  ;;  %v229_v7 = vld [vmem:[%s223_s17 + $0x18] sm:$0xff]  ;;  %v554_v12 = vld [vmem:[%s910_s2] ss:$0 sm:$0xff]  ;;  %s485_s17 = sshll.u32 %s218_s16, 4  ;;  %s861_s17 = int_to_ptr.vmem [resolvable:$true] %s485_s17 }
  0x18   : > { %609 = vmatprep.subr.mxu0 %v231_v2  ;;  %621 = vmatprep.subr.mxu1 %v345_v9  ;;  %v559_v26 = vld [vmem:[%s912_s4] ss:$0 sm:$0xff]  ;;  %s674_s7 = scalar_lea.vmem %s861_s17, 256  ;;  %p681_p0 = scmp.lt.s32.totalorder %s861_s17, %s679_s8 }
  0x19   : > { %610 = vmatpush3.msra.mxu0 %v231_v2  ;;  %622 = vmatpush3.msra.mxu1 %v345_v9  ;;  %p675_p11 = scmp.ne.s32.totalorder %s861_s17, %s674_s7  ;;  %p682_p1 = scmp.lt.s32.totalorder %s680_s9, %s674_s7 }
  0x1a   : > { %611 = vmatprep.subr.mxu0 %v230_v3  ;;  %623 = vmatprep.subr.mxu1 %v344_v10 }
  0x1b   : > { %612 = vmatpush3.msra.mxu0 %v230_v3  ;;  %624 = vmatpush3.msra.mxu1 %v344_v10  ;;  %p676_p12 = pnand %p675_p11, %p807_p5  ;;  %p683_p2 = por %p682_p1, %p681_p0 }
  0x1c   : > { %614 = vmatmul.mubr.msk.f32.vlgmr.msra.gmra.mxu0 %vm241_vm0, %v227_v5  ;;  %625 = vmatprep.subr.mxu1 %v343_v11 }
  0x1d   : > { %616 = vmatprep.mubr.msk.f32.mxu0 %vm241_vm0, %v228_v6  ;;  %626 = vmatpush3.msra.mxu1 %v343_v11  ;;  %p677_p13 = pneg %p676_p12 }
  0x1f   : > { %p684_p3 = pnand %p683_p2, %p677_p13 }
  0x20   : > { %617 = vmatmul.mubr.msk.f32.gmra.mxu0 %vm241_vm0, %v229_v7 }
  0xdc   : > { %v615_v13 = vpop.f32.mrf.mxu0 }
  0xdd   : > { %v326_v14 = vadd.f32 %v615_v13, %v554_v12 }
  0xde   : > { %v320_v15 = vpop.f32.mrf.mxu0 }
  0xdf   : > { %v321_v16 = vadd.f32 %v554_v12, %v320_v15  ;;  %v340_v19 = vmax.f32 %v326_v14, 0.0 }
  0xe0   : > { %v618_v17 = vpop.f32.mrf.mxu0 }
  0xe1   : > { %v339_v18 = vmax.f32 %v321_v16, 0.0  ;;  %v336_v20 = vadd.f32 %v618_v17, %v554_v12 }
  0xe2   : > { %v330_v21 = vpop.f32.mrf.mxu0 }
  0xe3   : > { %v331_v22 = vadd.f32 %v554_v12, %v330_v21  ;;  %627 = vmatprep.mubr.msk.f32.mxu1 %vm241_vm0, %v339_v18  ;;  %v342_v24 = vmax.f32 %v336_v20, 0.0 }
  0xe4   : > { %628 = vmatmul.mubr.msk.f32.vlgmr.msra.gmra.mxu1 %vm241_vm0, %v340_v19 }
  0xe5   : > { %v341_v23 = vmax.f32 %v331_v22, 0.0 }
  0xe7   : > { %630 = vmatprep.mubr.msk.f32.mxu1 %vm241_vm0, %v341_v23 }
  0xe8   : > { %631 = vmatmul.mubr.msk.f32.gmra.mxu1 %vm241_vm0, %v342_v24 }
 0x1a4   : > { %v629_v25 = vpop.f32.mrf.mxu1 }
 0x1a5   : > { %v438_v28 = vadd.f32 %v629_v25, %v559_v26 }
 0x1a6   : > { %v432_v27 = vpop.f32.mrf.mxu1 }
 0x1a7   : > { %v433_v29 = vadd.f32 %v559_v26, %v432_v27 }
 0x1a8   : > { %v632_v30 = vpop.f32.mrf.mxu1 }
 0x1a9   : > { %v581_v31 = vpack.c.bf16 %v438_v28, %v433_v29  ;;  %v448_v33 = vadd.f32 %v632_v30, %v559_v26 }
 0x1aa   : > { %v442_v32 = vpop.f32.mrf.mxu1 }
 0x1ab   : > { %582 = vst [vmem:[%s218_s16] sm:$0xff] %v581_v31   ;;  %v443_v34 = vadd.f32 %v559_v26, %v442_v32 }
 0x1ad   : > { %v586_v35 = vpack.c.bf16 %v448_v33, %v443_v34 }
 0x1af   : > { %588 = vst [vmem:[%s218_s16 + $0x8] sm:$0xff] %v586_v35  }
 0x1b0   : > { %687 = shalt.err (!%p684_p3)
}
 0x1b1   : > { %s688_s10 = scalar_lea.hbm %s866_s30, 256  ;;  %s692_s13 = scalar_lea.hbm %s913_s5, 768 }
 0x1b2   : > { %p689_p4 = scmp.ne.s32.totalorder %s866_s30, %s688_s10  ;;  %p693_p9 = scmp.lt.s32.totalorder %s866_s30, %s913_s5 }
 0x1b3   : > { %p694_p10 = scmp.lt.s32.totalorder %s692_s13, %s688_s10 }
 0x1b4   : > { %p690_p7 = pnand %p689_p4, %p807_p5 }
 0x1b5   : > { %p695_p11 = por %p694_p10, %p693_p9 }
 0x1b6   : > { %p691_p8 = pneg %p690_p7 }
 0x1b8   : > { %p696_p12 = pnand %p695_p11, %p691_p8 }
 0x1ba   : > { %699 = shalt.err (!%p696_p12)
}
 0x1bb   : > { %s737_s16 = smov 64   ;;  %s738_s23 = smov 4  }
 0x1bc   : > { %633 = dma.vmem_to_hbm [thread:$0]  (%p807_p5), %s861_s17, 256, %s866_s30, %s868_s6, %s737_s16, %s737_s16, %s738_s23  }
 0x1bd PF: > { %p639_p13 = scmp.ge.s32.totalorder %s734_s21, 2  ;;  %s500_s25 = sand.u32 1, %s722_s18  }
 0x1be   : > { %s501_s26 = scalar_lea.sflag [#allocation3], %s500_s25 }
 0x1bf   : > { %p636_p0 = pnand %p639_p13, %p811_p6 }
 0x1c1   : > { %p637_p1 = pneg %p636_p0 }
 0x1c3   : > { %717 = dma.done.wait (%p637_p1), %s501_s26, 256  }
 0x1c4   : > { %719 = vsyncadd (%p637_p1), %s501_s26, 4294967040  ;;  %p15_p2 = scmp.ge.s32.totalorder %s794_s24, 5   ;;  %s916_s18 = smov %s726_s19 }
 0x1c5   : > { %s917_s19 = smov %s730_s20  ;;  %s918_s20 = smov %s805_s27 }
 0x1c6   : > { %s919_s21 = smov %s794_s24  ;;  %17 = sbr.rel (!%p15_p2) target bundleno = 3 (0x3), region = 75 }
 0x1cb   :  { %506 = vsyncpa [#allocation3], 1 }
 0x1cc   :  { %508 = vsyncpa [#allocation3 + $0x1], 1 }

</bundles_post_ra>
